<compile_context>
chip_gen: v6e
topology: v6e:2x2x1
jax: 0.10.0
libtpu: 0.0.40
codegen_flags: <defaults>
</compile_context>

<pallas_src>
import jax
import jax.numpy as jnp
from jax.experimental import pallas as pl
from jax.experimental.pallas import tpu as pltpu

_LANES = 128
_MIB = 1024 * 1024


def _abs_kernel(x_ref, o_ref):
    # Elementwise abs on the current VMEM tile (single VPU pass).
    o_ref[...] = jnp.abs(x_ref[...])


def _pick_block_and_vmem_limit():
    """Generation-tuned (block_bytes, vmem_limit_bytes).

    v7x  (<=64 MiB VMEM/TC, ~3.2 TB/s HBM): fixed ~0.35 us/step overhead is
         proportionally largest, so use 8 MiB blocks; 4 double-buffered
         buffers = 32 MiB, scoped limit raised to 48 MiB (< 64 MiB physical).
    v5e/v6e (128 MiB VMEM, 0.82 / 1.4 TB/s HBM): 4 MiB blocks already push
         per-step overhead well under ~5%; 16 MiB of buffers sits exactly at
         v5e's 16 MiB scoped default, so request 32 MiB.
    """
    try:
        vmem_cap = int(pltpu.get_tpu_info().vmem_capacity_bytes)
    except Exception:
        vmem_cap = 128 * _MIB  # conservative fallback (v5e/v6e-sized)
    if vmem_cap <= 64 * _MIB:        # v7x-class chip
        block_bytes = 8 * _MIB
    else:                            # v5e / v6e
        block_bytes = 4 * _MIB
    # in + out, double-buffered (4 x block) plus headroom, never above physical.
    vmem_limit = min(vmem_cap, 4 * block_bytes + 16 * _MIB)
    return block_bytes, vmem_limit


def apply_abs(x: jax.Array) -> jax.Array:
    """Elementwise |x| via a tiled Pallas kernel. Preserves shape & dtype."""
    orig_shape = x.shape
    dtype = x.dtype
    n = x.size

    if n == 0:
        return jnp.abs(x)  # empty tensor: nothing to launch

    itemsize = jnp.dtype(dtype).itemsize
    # dtype-aware sublane multiple: f32 -> 8, bf16/f16 -> 16, int8/fp8 -> 32
    sub = 8 * max(1, 4 // itemsize)

    # Truly ragged sizes: the old pad + [:n] slice fallback cost ~2 extra full
    # HBM read/write passes on a purely bandwidth-bound op.  XLA's fused abs
    # is already at roofline for these shapes, so just use it.
    if n % _LANES != 0:
        return jnp.abs(x)

    rows = n // _LANES
    x2d = x.reshape(rows, _LANES)  # metadata-only reshape (contiguous input)

    block_bytes, vmem_limit = _pick_block_and_vmem_limit()

    # Block rows sized by bytes, rounded down to the dtype sublane multiple.
    block_rows = (block_bytes // (_LANES * itemsize)) // sub * sub
    block_rows = max(sub, block_rows)
    if block_rows > rows:
        # Keep the block no larger than the array: full-extent blocks are
        # always legal, otherwise take the largest sub-multiple <= rows.
        # A ragged last row-block is handled by the cdiv grid (masked stores).
        block_rows = rows if rows < sub else (rows // sub) * sub

    grid = (pl.cdiv(rows, block_rows),)

    # TODO(synk): verify via xprof that ("parallel",) shards this 1-D grid
    # across both TensorCores on v7x; if only one TC is active, switch to
    # pltpu.CORE_PARALLEL or a pl.core_map over create_tensorcore_mesh.
    out2d = pl.pallas_call(
        _abs_kernel,
        out_shape=jax.ShapeDtypeStruct((rows, _LANES), dtype),
        grid_spec=pltpu.PrefetchScalarGridSpec(
            num_scalar_prefetch=0,
            grid=grid,
            in_specs=[pl.BlockSpec((block_rows, _LANES), lambda i: (i, 0))],
            out_specs=pl.BlockSpec((block_rows, _LANES), lambda i: (i, 0)),
        ),
        compiler_params=pltpu.CompilerParams(
            dimension_semantics=("parallel",),
            vmem_limit_bytes=vmem_limit,
        ),
        cost_estimate=pl.CostEstimate(
            flops=n, transcendentals=0, bytes_accessed=2 * n * itemsize
        ),
        # TODO(synk): for torch.abs_-style in-place use (donatable buffer),
        # add input_output_aliases={0: 0} and donate x at the jit boundary.
    )(x2d)

    return out2d.reshape(orig_shape)


if __name__ == "__main__":
    key = jax.random.PRNGKey(0)
    k1, k2, k3 = jax.random.split(key, 3)

    # NCHW-style tensor: batch=2, C=4, H=W=16 (lane-aligned fast path).
    x = jax.random.normal(key, (2, 4, 16, 16), dtype=jnp.float32)
    y = apply_abs(x)
    jax.block_until_ready(y)
    assert y.shape == x.shape and y.dtype == x.dtype
    assert jnp.allclose(y, jnp.abs(x)), "mismatch vs jnp.abs reference"

    # Lane-aligned but rows (15) not a multiple of the sublane tile (8):
    # exercises the relaxed n % 128 fast path with a masked partial last block.
    x_partial = jax.random.normal(k1, (3, 5, 128), dtype=jnp.float32)
    y_partial = apply_abs(x_partial)
    jax.block_until_ready(y_partial)
    assert jnp.allclose(y_partial, jnp.abs(x_partial)), "partial-block mismatch"

    # bf16: exercises the dtype-aware sublane multiple (sub=16).
    x_bf16 = jax.random.normal(k2, (4, 8, 32), dtype=jnp.bfloat16)
    y_bf16 = apply_abs(x_bf16)
    jax.block_until_ready(y_bf16)
    assert jnp.allclose(y_bf16, jnp.abs(x_bf16)), "bf16-path mismatch"

    # Truly ragged size: handled by XLA's fused abs (no pad + slice HBM passes).
    x_ragged = jax.random.normal(k3, (3, 5, 7), dtype=jnp.float32)
    y_ragged = apply_abs(x_ragged)
    jax.block_until_ready(y_ragged)
    assert jnp.allclose(y_ragged, jnp.abs(x_ragged)), "ragged-path mismatch"

    print("KERNEL_OK")
</pallas_src>

<mosaic_0001>
module attributes {stable_mosaic.version = 11 : i64} {
  func.func @_abs_kernel(%arg0: i32, %arg1: memref<16x128xf32, #tpu.memory_space<vmem>>, %arg2: memref<16x128xf32, #tpu.memory_space<vmem>>) attributes {dimension_semantics = [#tpu.dimension_semantics<parallel>], iteration_bounds = array<i64: 1>, scalar_prefetch = 0 : i64, scratch_operands = 0 : i64, tpu.core_type = #tpu.core_type<tc>, window_params = [{transform_indices = @transform_0, window_bounds = array<i64: 16, 128>}, {transform_indices = @transform_1, window_bounds = array<i64: 16, 128>}]} {
    %c0 = arith.constant 0 : index
    %c0_0 = arith.constant 0 : index
    %0 = vector.load %arg1[%c0, %c0_0] : memref<16x128xf32, #tpu.memory_space<vmem>>, vector<16x128xf32>
    %1 = math.absf %0 : vector<16x128xf32>
    %c0_1 = arith.constant 0 : index
    %c0_2 = arith.constant 0 : index
    %2 = vector.load %arg2[%c0_1, %c0_2] : memref<16x128xf32, #tpu.memory_space<vmem>>, vector<16x128xf32>
    tpu.vector_store %arg2[%c0_1, %c0_2], %1 {strides = array<i32>} : memref<16x128xf32, #tpu.memory_space<vmem>>, vector<16x128xf32>,
    return
  }
  func.func @transform_0(%arg0: i32) -> (i32, i32) {
    %c0_i32 = arith.constant 0 : i32
    %c0_i32_0 = arith.constant 0 : i32
    return %arg0, %c0_i32 : i32, i32
  }
  func.func @transform_1(%arg0: i32) -> (i32, i32) {
    %c0_i32 = arith.constant 0 : i32
    %c0_i32_0 = arith.constant 0 : i32
    return %arg0, %c0_i32 : i32, i32
  }
}

</mosaic_0001>

<bundles_post_ra>
// kernel: tpu_custom_call.1
= control target key start
LH: loop header
LB: loop body
LE: loop exit
PB: predicated region body
PF: predicated region fallthrough
CT: control target
= control target key end

     0   :  { %6 = vsyncpa [#allocation3], 0  ;;  %s114_s0 = inlined_call_operand.hbm [shape: f32[16,128], index: 0, kind: input, shape index: {}]   ;;  %s115_s1 = inlined_call_operand.hbm [shape: f32[16,128], index: 1, kind: output, shape index: {}]  }
   0x1   :  { %7 = vsyncpa [#allocation4], 0  ;;  %s94_s6 = smov [#allocation2]  }
   0x2   :  { %s13_s7 = sshll.u32 %s94_s6, 4  ;;  %s14_s7 = int_to_ptr.vmem [resolvable:$true] %s13_s7 }
   0x3   :  { %s58_s8 = scalar_lea.vmem %s14_s7, 256  ;;  %p63_p1 = scmp.lt.s32.totalorder %s14_s7, %s14_s7 }
   0x4   :  { %p59_p0 = scmp.ne.s32.totalorder %s14_s7, %s58_s8  ;;  %p64_p2 = scmp.lt.s32.totalorder %s58_s8, %s58_s8 }
   0x6   :  { %p65_p3 = por %p64_p2, %p63_p1 }
   0x8   :  { %p66_p4 = pnand %p65_p3, %p59_p0 }
   0xa   :  { %69 = shalt.err (!%p66_p4)
}
   0xb   :  { %s95_s9 = smov 128   ;;  %s96_s10 = smov 8  }
   0xc   :  { %19 = dma.hbm_to_vmem [thread:$0]  %s114_s0, 256, %s14_s7, [#allocation3], %s95_s9, %s95_s9, %s96_s10  }
   0xd   :  { %90 = dma.done.wait [#allocation3], 256  }
   0xe   :  { %91 = vsyncadd [#allocation3], 4294967040  ;;  %s97_s13 = smov [#allocation5]   ;;  %v23_v0 = vld [vmem:[#allocation2] sm:$0xff]  ;;  %v24_v1 = vld [vmem:[#allocation2 + $0x8] sm:$0xff] }
   0xf   :  { %s34_s14 = sshll.u32 %s97_s13, 4  ;;  %v25_v2 = vand.u32 2147483647, %v23_v0  ;;  %v26_v3 = vand.u32 2147483647, %v24_v1  ;;  %s35_s14 = int_to_ptr.vmem [resolvable:$true] %s34_s14 }
  0x10   :  { %s70_s15 = scalar_lea.vmem %s35_s14, 256  ;;  %p75_p6 = scmp.lt.s32.totalorder %s35_s14, %s35_s14 }
  0x11   :  { %27 = vst [vmem:[#allocation5] sm:$0xff] %v25_v2  ;;  %28 = vst [vmem:[#allocation5 + $0x8] sm:$0xff] %v26_v3  ;;  %p71_p5 = scmp.ne.s32.totalorder %s35_s14, %s70_s15  ;;  %p76_p7 = scmp.lt.s32.totalorder %s70_s15, %s70_s15 }
  0x13   :  { %p77_p8 = por %p76_p7, %p75_p6 }
  0x15   :  { %p78_p9 = pnand %p77_p8, %p71_p5 }
  0x17   :  { %81 = shalt.err (!%p78_p9)
}
  0x18   :  { %40 = dma.vmem_to_hbm [thread:$0]  %s35_s14, 256, %s115_s1, [#allocation4], %s95_s9, %s95_s9, %s96_s10  }
  0x19   :  { %92 = dma.done.wait [#allocation4], 256  }
  0x1a   :  { %93 = vsyncadd [#allocation4], 4294967040 }
  0x1b   :  { %44 = vsyncpa [#allocation3], 1 }
  0x1c   :  { %45 = vsyncpa [#allocation4], 1 }

</bundles_post_ra>
